<compile_context>
chip_gen: v6e
topology: v6e:2x2x1
jax: 0.10.0
libtpu: 0.0.40
codegen_flags: <defaults>
</compile_context>

<pallas_src>
import functools

import jax
import jax.numpy as jnp
from jax.experimental import pallas as pl
from jax.experimental.pallas import tpu as pltpu

_CLAMP_MIN = 1e-12
_CLAMP_MAX = 1e12


def _center_loss_kernel(labels_ref, x_ref, c_ref, out_ref, *, num_classes):
    # labels_ref : SMEM (B,) int32      (scalar prefetch; also drives index_maps)
    # x_ref      : VMEM (1, 1, D)       row i of the features
    # c_ref      : VMEM (1, 1, D)       row labels[i] of the centers (gathered)
    # out_ref    : VMEM (1, 1) float32  resident accumulator -> final loss
    i = pl.program_id(0)

    @pl.when(i == 0)
    def _():
        out_ref[...] = jnp.zeros_like(out_ref)

    x = x_ref[0].astype(jnp.float32)          # (1, D)
    c = c_ref[0].astype(jnp.float32)          # (1, D)
    d = x - c
    row = jnp.sum(d * d, axis=-1, keepdims=True)            # (1, 1)
    out_ref[...] += jnp.clip(row, _CLAMP_MIN, _CLAMP_MAX)

    @pl.when(i == pl.num_programs(0) - 1)
    def _():
        inv_b = 1.0 / jnp.float32(pl.num_programs(0))
        # Masked-out entries of the reference each clamp to 1e-12:
        # (C - 1) per row, divided by B -> (C - 1) * 1e-12 added to the loss.
        const = jnp.float32(num_classes - 1) * jnp.float32(_CLAMP_MIN)
        out_ref[...] = out_ref[...] * inv_b + const


def center_loss(x, centers, labels):
    """x: (B, D) float, centers: (C, D) float, labels: (B,) int."""
    B, D = x.shape
    C, Dc = centers.shape
    assert D == Dc

    # Reshape so the last two block dims equal the full array dims (clean
    # (8,128)-rule compliance for single-row windows).
    x3 = x.reshape(B, 1, D)
    c3 = centers.reshape(C, 1, D)
    labels_i32 = labels.astype(jnp.int32).reshape(B)

    kernel = functools.partial(_center_loss_kernel, num_classes=C)

    out = pl.pallas_call(
        kernel,
        out_shape=jax.ShapeDtypeStruct((1, 1), jnp.float32),
        grid_spec=pltpu.PrefetchScalarGridSpec(
            num_scalar_prefetch=1,
            grid=(B,),
            in_specs=[
                # feature row i
                pl.BlockSpec((1, 1, D), lambda i, labels: (i, 0, 0)),
                # gathered center row labels[i]  (label-driven index_map)
                pl.BlockSpec((1, 1, D), lambda i, labels: (labels[i], 0, 0)),
            ],
            out_specs=pl.BlockSpec((1, 1), lambda i, labels: (0, 0)),
        ),
        compiler_params=pltpu.CompilerParams(
            dimension_semantics=("arbitrary",)),
    )(labels_i32, x3, c3)
    return out[0, 0]


def center_loss_ref(x, centers, labels):
    """Pure-JAX reference mirroring the PyTorch forward exactly."""
    B = x.shape[0]
    C = centers.shape[0]
    x = x.astype(jnp.float32)
    centers = centers.astype(jnp.float32)
    distmat = (jnp.sum(x**2, axis=1, keepdims=True)
               + jnp.sum(centers**2, axis=1, keepdims=True).T
               - 2.0 * x @ centers.T)
    mask = (labels[:, None] == jnp.arange(C)[None, :]).astype(jnp.float32)
    dist = jnp.clip(distmat * mask, _CLAMP_MIN, _CLAMP_MAX)
    return jnp.sum(dist) / B


if __name__ == "__main__":
    # Small, deterministic shapes consistent with the module's forward:
    # x: (batch, feat_dim), labels: (batch,), centers: (num_classes, feat_dim)
    batch, feat_dim, num_classes = 8, 256, 8

    key = jax.random.PRNGKey(0)
    k_x, k_c, k_l = jax.random.split(key, 3)
    x = jax.random.normal(k_x, (batch, feat_dim), dtype=jnp.float32)
    centers = jax.random.normal(k_c, (num_classes, feat_dim), dtype=jnp.float32)
    labels = jax.random.randint(k_l, (batch,), 0, num_classes, dtype=jnp.int32)

    loss = center_loss(x, centers, labels)
    loss = jax.block_until_ready(loss)

    ref = center_loss_ref(x, centers, labels)
    assert jnp.allclose(loss, ref, rtol=1e-5, atol=1e-4), (loss, ref)

    print("KERNEL_OK")
</pallas_src>

<mosaic_0001>
module attributes {stable_mosaic.version = 11 : i64} {
  func.func @_center_loss_kernel(%arg0: i32, %arg1: memref<8xi32, #tpu.memory_space<smem>>, %arg2: memref<1x1x256xf32, #tpu.memory_space<vmem>>, %arg3: memref<1x1x256xf32, #tpu.memory_space<vmem>>, %arg4: memref<1x1xf32, #tpu.memory_space<vmem>>) attributes {dimension_semantics = [#tpu.dimension_semantics<arbitrary>], iteration_bounds = array<i64: 8>, scalar_prefetch = 1 : i64, scratch_operands = 0 : i64, tpu.core_type = #tpu.core_type<tc>, window_params = [{transform_indices = @transform_0, window_bounds = array<i64: 1, 1, 256>}, {transform_indices = @transform_1, window_bounds = array<i64: 1, 1, 256>}, {pipeline_mode = #tpu.pipeline_mode<synchronous>, transform_indices = @transform_2, window_bounds = array<i64: 1, 1>}]} {
    %c0_i32 = arith.constant 0 : i32
    %0 = arith.cmpi eq, %arg0, %c0_i32 : i32
    %1 = arith.extui %0 : i1 to i32
    %c0_i32_0 = arith.constant 0 : i32
    %2 = arith.cmpi ne, %1, %c0_i32_0 : i32
    scf.if %2 {
      %cst_13 = arith.constant 0.000000e+00 : f32
      %21 = vector.broadcast %cst_13 : f32 to vector<1x1xf32>
      %c0_14 = arith.constant 0 : index
      %c0_15 = arith.constant 0 : index
      %22 = vector.load %arg4[%c0_14, %c0_15] : memref<1x1xf32, #tpu.memory_space<vmem>>, vector<1x1xf32>
      tpu.vector_store %arg4[%c0_14, %c0_15], %21 {strides = array<i32>} : memref<1x1xf32, #tpu.memory_space<vmem>>, vector<1x1xf32>,
    } else {
    }
    %c0 = arith.constant 0 : index
    %c0_1 = arith.constant 0 : index
    %c0_2 = arith.constant 0 : index
    %3 = vector.load %arg2[%c0, %c0_1, %c0_2] : memref<1x1x256xf32, #tpu.memory_space<vmem>>, vector<1x1x256xf32>
    %4 = vector.shape_cast %3 : vector<1x1x256xf32> to vector<1x256xf32>
    %c0_3 = arith.constant 0 : index
    %c0_4 = arith.constant 0 : index
    %c0_5 = arith.constant 0 : index
    %5 = vector.load %arg3[%c0_3, %c0_4, %c0_5] : memref<1x1x256xf32, #tpu.memory_space<vmem>>, vector<1x1x256xf32>
    %6 = vector.shape_cast %5 : vector<1x1x256xf32> to vector<1x256xf32>
    %7 = arith.subf %4, %6 : vector<1x256xf32>
    %8 = arith.mulf %7, %7 : vector<1x256xf32>
    %cst = arith.constant dense<0.000000e+00> : vector<1xf32>
    %9 = vector.multi_reduction <add>, %8, %cst [1] : vector<1x256xf32> to vector<1xf32>
    %10 = vector.shape_cast %9 : vector<1xf32> to vector<1x1xf32>
    %c0_6 = arith.constant 0 : index
    %c0_7 = arith.constant 0 : index
    %11 = vector.load %arg4[%c0_6, %c0_7] : memref<1x1xf32, #tpu.memory_space<vmem>>, vector<1x1xf32>
    %cst_8 = arith.constant 9.99999996E-13 : f32
    %cst_9 = arith.constant 9.99999995E+11 : f32
    %12 = vector.broadcast %cst_8 : f32 to vector<1x1xf32>
    %13 = arith.maximumf %12, %10 : vector<1x1xf32>
    %14 = vector.broadcast %cst_9 : f32 to vector<1x1xf32>
    %15 = arith.minimumf %14, %13 : vector<1x1xf32>
    %16 = arith.addf %11, %15 : vector<1x1xf32>
    %c0_10 = arith.constant 0 : index
    %c0_11 = arith.constant 0 : index
    %17 = vector.load %arg4[%c0_10, %c0_11] : memref<1x1xf32, #tpu.memory_space<vmem>>, vector<1x1xf32>
    tpu.vector_store %arg4[%c0_10, %c0_11], %16 {strides = array<i32>} : memref<1x1xf32, #tpu.memory_space<vmem>>, vector<1x1xf32>,
    %c7_i32 = arith.constant 7 : i32
    %18 = arith.cmpi eq, %arg0, %c7_i32 : i32
    %19 = arith.extui %18 : i1 to i32
    %c0_i32_12 = arith.constant 0 : i32
    %20 = arith.cmpi ne, %19, %c0_i32_12 : i32
    scf.if %20 {
      %cst_13 = arith.constant 1.000000e+00 : f32
      %cst_14 = arith.constant 8.000000e+00 : f32
      %21 = arith.divf %cst_13, %cst_14 : f32
      %cst_15 = arith.constant 7.000000e+00 : f32
      %cst_16 = arith.constant 9.99999996E-13 : f32
      %22 = arith.mulf %cst_15, %cst_16 : f32
      %c0_17 = arith.constant 0 : index
      %c0_18 = arith.constant 0 : index
      %23 = vector.load %arg4[%c0_17, %c0_18] : memref<1x1xf32, #tpu.memory_space<vmem>>, vector<1x1xf32>
      %24 = vector.broadcast %21 : f32 to vector<1x1xf32>
      %25 = arith.mulf %23, %24 : vector<1x1xf32>
      %26 = vector.broadcast %22 : f32 to vector<1x1xf32>
      %27 = arith.addf %25, %26 : vector<1x1xf32>
      %c0_19 = arith.constant 0 : index
      %c0_20 = arith.constant 0 : index
      %28 = vector.load %arg4[%c0_19, %c0_20] : memref<1x1xf32, #tpu.memory_space<vmem>>, vector<1x1xf32>
      tpu.vector_store %arg4[%c0_19, %c0_20], %27 {strides = array<i32>} : memref<1x1xf32, #tpu.memory_space<vmem>>, vector<1x1xf32>,
    } else {
    }
    return
  }
  func.func @transform_0(%arg0: i32, %arg1: memref<8xi32, #tpu.memory_space<smem>>) -> (i32, i32, i32) {
    %c0_i32 = arith.constant 0 : i32
    %c0_i32_0 = arith.constant 0 : i32
    %c0_i32_1 = arith.constant 0 : i32
    return %arg0, %c0_i32, %c0_i32_0 : i32, i32, i32
  }
  func.func @transform_1(%arg0: i32, %arg1: memref<8xi32, #tpu.memory_space<smem>>) -> (i32, i32, i32) {
    %0 = arith.index_cast %arg0 : i32 to index
    %1 = memref.load %arg1[%0] : memref<8xi32, #tpu.memory_space<smem>>
    %c0_i32 = arith.constant 0 : i32
    %c0_i32_0 = arith.constant 0 : i32
    %c0_i32_1 = arith.constant 0 : i32
    return %1, %c0_i32, %c0_i32_0 : i32, i32, i32
  }
  func.func @transform_2(%arg0: i32, %arg1: memref<8xi32, #tpu.memory_space<smem>>) -> (i32, i32) {
    %c0_i32 = arith.constant 0 : i32
    %c0_i32_0 = arith.constant 0 : i32
    %c0_i32_1 = arith.constant 0 : i32
    return %c0_i32, %c0_i32_0 : i32, i32
  }
}

</mosaic_0001>

<bundles_post_ra>
// kernel: tpu_custom_call.1
= control target key start
LH: loop header
LB: loop body
LE: loop exit
PB: predicated region body
PF: predicated region fallthrough
CT: control target
= control target key end

     0   :  { %s575_s12 = smov [#allocation3]   ;;  %s805_s0 = inlined_call_operand.hbm [shape: s32[8], index: 0, kind: input, shape index: {}]   ;;  %s806_s1 = inlined_call_operand.hbm [shape: f32[8,1,256], index: 1, kind: input, shape index: {}]   ;;  %s807_s2 = inlined_call_operand.hbm [shape: f32[8,1,256], index: 2, kind: input, shape index: {}]   ;;  %s808_s3 = inlined_call_operand.hbm [shape: f32[1,1], index: 3, kind: output, shape index: {}]  }
   0x1   :  { %9 = dma.hbm_to_smem %s805_s0, 16, %s575_s12, [#allocation2] }
   0x2   :  { %533 = dma.done.wait [#allocation2], 16 }
   0x3   :  { %534 = vsyncadd [#allocation2], 4294967280 }
   0x4   :  { %11 = sfence }
   0x5   :  { %12 = vsyncpa [#allocation5], 0 }
   0x6   :  { %14 = vsyncpa [#allocation5 + $0x1], 0 }
   0x7   :  { %15 = vsyncpa [#allocation8], 0 }
   0x8   :  { %17 = vsyncpa [#allocation8 + $0x1], 0 }
   0x9   :  { %18 = vsyncpa [#allocation6], 0  ;;  %s603_s15 = smov 0   ;;  %s605_s16 = smov 0  }
   0xa   :  { %s607_s17 = smov 0   ;;  %s609_s18 = smov 0  }
   0xb   :  { %s611_s19 = smov 0   ;;  %s613_s20 = smov 0  }
   0xc   :  { %s615_s0 = smov 0  }
   0xd LB: > { %s637_s21 = sadd.s32 4294967295, %s573_s0   ;;  %s640_s22 = sadd.s32 1, %s573_s0   ;;  %s573_s0 = sphi %s615_s0, %s836_s0   ;;  %s569_s20 = sphi %s613_s20, %s835_s20   ;;  %s565_s19 = sphi %s611_s19, %s834_s19   ;;  %s561_s18 = sphi %s609_s18, %s833_s18   ;;  %s557_s17 = sphi %s607_s17, %s832_s17   ;;  %s553_s16 = sphi %s605_s16, %s831_s16   ;;  %s549_s15 = sphi %s603_s15, %s830_s15  }
   0xe   : > { %s28_s23 = ssub.s32 %s573_s0, %s640_s22  ;;  %s31_s24 = sadd.s32 1, %s569_s20 }
   0xf   : > { %p29_p0 = scmp.eq.s32.totalorder %s28_s23, 0  ;;  %p38_p1 = scmp.ne.s32.totalorder %s569_s20, %s565_s19 }
  0x10   : > { %p811_p2 = scmp.eq.s32.totalorder %s573_s0, 0  ;;  %p44_p3 = scmp.ne.s32.totalorder %s565_s19, %s561_s18 }
  0x11   : > { %s650_s25 = scalar_select %p29_p0, %s569_s20, %s31_s24  }
  0x12   : > { %p40_p4 = por %p811_p2, %p38_p1  ;;  %p810_p5 = scmp.eq.s32.totalorder %s637_s21, 0 }
  0x13   : > { %s656_s26 = sld [smem:[#allocation3 + %s640_s22]]  ;;  %p809_p7 = scmp.lt.s32.totalorder %s573_s0, 8 }
  0x14   : > { %p660_p6 = por %p810_p5, %p44_p3  ;;  %s117_s28 = sand.u32 1, %s569_s20  }
  0x15   : > { %s334_s29 = sshll.u32 %s573_s0, 5  ;;  %s319_s30 = sshll.u32 %s117_s28, 1 }
  0x16   : > { %s814_s27 = scalar_select %p660_p6, 1, 0 }
  0x17   : > { %s670_s6 = scalar_lea.hbm %s806_s1, %s334_s29  ;;  %s121_s7 = scalar_lea.vmem [#allocation4], %s319_s30 }
  0x18   : > { %s129_s8 = sshll.u32 %s121_s7, 4  ;;  %p674_p8 = pnand %p809_p7, %p40_p4  ;;  %s678_s8 = int_to_ptr.vmem [resolvable:$true] %s129_s8 }
  0x19   : > { %s118_s10 = scalar_lea.sflag [#allocation5], %s117_s28  ;;  %s425_s11 = scalar_lea.hbm %s670_s6, 32 }
  0x1a   : > { %p426_p11 = scmp.ne.s32.totalorder %s670_s6, %s425_s11  ;;  %p427_p12 = pneg %p674_p8 }
  0x1b   : > { %s430_s14 = scalar_lea.hbm %s806_s1, 256  ;;  %p431_p1 = scmp.lt.s32.totalorder %s670_s6, %s806_s1 }
  0x1c   : > { %p428_p13 = pnand %p427_p12, %p426_p11  ;;  %p432_p3 = scmp.lt.s32.totalorder %s430_s14, %s425_s11 }
  0x1e   : > { %p429_p0 = pneg %p428_p13  ;;  %p433_p4 = por %p432_p3, %p431_p1 }
  0x20   : > { %p434_p7 = pnand %p433_p4, %p429_p0 }
  0x22   : > { %437 = shalt.err (!%p434_p7)
}
  0x23   : > { %s438_s24 = scalar_lea.vmem %s678_s8, 32  ;;  %s576_s28 = smov [#allocation4]  }
  0x24   : > { %p439_p5 = scmp.ne.s32.totalorder %s678_s8, %s438_s24  ;;  %s443_s29 = sshll.u32 %s576_s28, 4  ;;  %s444_s29 = int_to_ptr.vmem [resolvable:$false] %s443_s29 }
  0x25   : > { %s445_s30 = scalar_lea.vmem %s444_s29, 64  ;;  %p446_p13 = scmp.lt.s32.totalorder %s678_s8, %s444_s29 }
  0x26   : > { %p441_p2 = pnand %p439_p5, %p427_p12  ;;  %p447_p9 = scmp.lt.s32.totalorder %s445_s30, %s438_s24 }
  0x28   : > { %p442_p11 = pneg %p441_p2  ;;  %p448_p10 = por %p447_p9, %p446_p13 }
  0x2a   : > { %p449_p6 = pnand %p448_p10, %p442_p11 }
  0x2c   : > { %452 = shalt.err (!%p449_p6)
}
  0x2d   : > { %349 = dma.hbm_to_vmem [thread:$0]  (!%p674_p8), %s670_s6, 32, %s678_s8, %s118_s10  }
  0x2e   : > { %p816_p2 = scmp.lt.s32.totalorder %s573_s0, 9  ;;  %p817_p5 = scmp.ge.s32.totalorder %s573_s0, 1 }
  0x2f   : > { %s54_s5 = sld [smem:[#allocation3 + %s573_s0]]  ;;  %p66_p7 = scmp.ne.s32.totalorder %s557_s17, %s553_s16 }
  0x30   : > { %p704_p6 = pnand %p817_p5, %p816_p2  ;;  %p72_p9 = scmp.ne.s32.totalorder %s553_s16, %s549_s15 }
  0x31   : > { %s136_s7 = sand.u32 1, %s557_s17   ;;  %p819_p10 = scmp.eq.s32.totalorder %s573_s0, 0 }
  0x32   : > { %s818_s4 = scalar_select %p704_p6, 1, 0 }
  0x33   : > { %p68_p12 = por %p66_p7, %p819_p10  ;;  %p820_p0 = scmp.eq.s32.totalorder %s637_s21, 0 }
  0x34   : > { %s59_s6 = sadd.s32 1, %s557_s17  ;;  %s322_s10 = sshll.u32 %s136_s7, 1 }
  0x35   : > { %p718_p1 = por %p72_p9, %p820_p0  ;;  %s56_s8 = ssub.s32 %s54_s5, %s656_s26 }
  0x36   : > { %p57_p8 = scmp.eq.s32.totalorder %s56_s8, 0  ;;  %p822_p3 = scmp.lt.s32.totalorder %s573_s0, 8 }
  0x37   : > { %s821_s9 = scalar_select %p718_p1, 1, 0 }
  0x38   : > { %p726_p4 = pnand %p822_p3, %p68_p12  ;;  %p824_p11 = pmov %p822_p3 }
  0x39   : > { %s337_s12 = scalar_select %p68_p12, [#allocation3], [#allocation10] }
  0x3a   : > { %s731_s15 = scalar_select %p57_p8, %s557_s17, %s59_s6  }
  0x3b   : > { %s338_s13 = scalar_select %p68_p12, %s573_s0, 0 }
  0x3c   : > { %s838_s12 = smov (!%p824_p11, %s337_s12), [#allocation11]  ;;  %p825_p13 = pmov %p822_p3 }
  0x3d   : > { %s140_s18 = scalar_lea.vmem [#allocation7], %s322_s10  ;;  %s137_s30 = scalar_lea.sflag [#allocation8], %s136_s7 }
  0x3e   : > { %s840_s13 = smov (!%p825_p13, %s338_s13), 0  ;;  %s149_s23 = sshll.u32 %s140_s18, 4  ;;  %s738_s23 = int_to_ptr.vmem [resolvable:$true] %s149_s23 }
  0x3f   : > { %s141_s14 = sld [smem:[%s838_s12 + %s840_s13]]  ;;  %p455_p5 = pneg %p726_p4 }
  0x40   : > { %s458_s8 = scalar_lea.hbm %s807_s2, 256 }
  0x45   : > { %s335_s26 = sshll.u32 %s141_s14, 5 }
  0x46   : > { %s147_s29 = scalar_lea.hbm %s807_s2, %s335_s26 }
  0x47   : > { %s453_s5 = scalar_lea.hbm %s147_s29, 32  ;;  %p459_p10 = scmp.lt.s32.totalorder %s147_s29, %s807_s2 }
  0x48   : > { %p454_p2 = scmp.ne.s32.totalorder %s147_s29, %s453_s5  ;;  %p460_p12 = scmp.lt.s32.totalorder %s458_s8, %s453_s5 }
  0x4a   : > { %p456_p7 = pnand %p455_p5, %p454_p2  ;;  %p461_p0 = por %p460_p12, %p459_p10 }
  0x4c   : > { %p457_p9 = pneg %p456_p7 }
  0x4e   : > { %p462_p8 = pnand %p461_p0, %p457_p9 }
  0x50   : > { %465 = shalt.err (!%p462_p8)
}
  0x51   : > { %s466_s7 = scalar_lea.vmem %s738_s23, 32  ;;  %s577_s13 = smov [#allocation7]  }
  0x52   : > { %p467_p3 = scmp.ne.s32.totalorder %s738_s23, %s466_s7  ;;  %s471_s14 = sshll.u32 %s577_s13, 4  ;;  %s472_s14 = int_to_ptr.vmem [resolvable:$false] %s471_s14 }
  0x53   : > { %s473_s18 = scalar_lea.vmem %s472_s14, 64  ;;  %p474_p2 = scmp.lt.s32.totalorder %s738_s23, %s472_s14 }
  0x54   : > { %p469_p11 = pnand %p467_p3, %p455_p5  ;;  %p475_p7 = scmp.lt.s32.totalorder %s473_s18, %s466_s7 }
  0x56   : > { %p470_p13 = pneg %p469_p11  ;;  %p476_p1 = por %p475_p7, %p474_p2 }
  0x58   : > { %p477_p6 = pnand %p476_p1, %p470_p13 }
  0x5a   : > { %480 = shalt.err (!%p477_p6)
}
  0x5b   : > { %354 = dma.hbm_to_vmem [thread:$0]  (!%p726_p4), %s147_s29, 32, %s738_s23, %s137_s30  }
  0x5c   : > { %p826_p9 = scmp.ne.s32.totalorder %s818_s4, 0 }
  0x5d   : > { %s160_s26 = sand.u32 (!%p826_p9), 1, %s565_s19   ;;  %p827_p5 = scmp.ne.s32.totalorder (!%p826_p9), %s814_s27, 0 }
  0x5e   : > { %158 = sbr.rel (%p826_p9) target bundleno = 296 (0x128), region = 28  ;;  %s326_s24 = sshll.u32 (!%p826_p9), %s160_s26, 1 }
  0x5f   : > { %s161_s28 = scalar_lea.sflag (!%p826_p9), [#allocation5], %s160_s26  ;;  %s164_s5 = scalar_lea.vmem (!%p826_p9), [#allocation4], %s326_s24 }
  0x63   : > { %536 = dma.done.wait (%p827_p5), %s161_s28, 32  }
  0x64   : > { %538 = vsyncadd (%p827_p5), %s161_s28, 4294967264  ;;  %s169_s6 = sand.u32 1, %s553_s16   ;;  %p828_p6 = scmp.ne.s32.totalorder %s821_s9, 0 }
  0x65   : > { %s327_s11 = sshll.u32 %s169_s6, 1  ;;  %s170_s0 = scalar_lea.sflag [#allocation8], %s169_s6 }
  0x66   : > { %s173_s23 = scalar_lea.vmem [#allocation7], %s327_s11 }
  0x67   : > { %540 = dma.done.wait (%p828_p6), %s170_s0, 32  }
  0x68   : > { %542 = vsyncadd (%p828_p6), %s170_s0, 4294967264  ;;  %p328_p1 = scmp.ne.s32.totalorder %s637_s21, 0 }
  0x6a   : > { %198 = sbr.rel (%p328_p1) target bundleno = 113 (0x71), region = 40 }
  0x6f   : > { %vm199_vm0 = vcmask 0   ;;  %v578_v0 = vmov 0.0  }
  0x70   : > { %200 = vst.msk [vmem:[#allocation9] sm:$0x1] %vm199_vm0, %v578_v0 }
  0x71 PF: > { %v201_v1 = vld [vmem:[%s164_s5] sm:$0x3]  ;;  %v202_v2 = vld [vmem:[%s173_s23] sm:$0x3]  ;;  %v206_v3 = vlaneseq  ;;  %vm216_vm1 = vcmask 1040384   ;;  %vm226_vm2 = vcmask 0  }
  0x72   : > { %v203_v4 = vsub.f32 %v201_v1, %v202_v2  ;;  %p329_p4 = scmp.ne.s32.totalorder %s637_s21, 7 }
  0x73   : > { %v207_v5 = vshrl.u32 %v206_v3, 7 }
  0x74   : > { %v204_v6 = vmul.f32 %v203_v4, %v203_v4 }
  0x75   : > { %v208_v7 = vsub.s32 0, %v207_v5  ;;  %v212_v8 = vsub.s32 1, %v207_v5 }
  0x77   : > { %v209_v9 = vrot.slane %v204_v6, %v208_v7  ;;  %v213_v10 = vrot.slane %v204_v6, %v212_v8  ;;  %v222_v16 = vld [vmem:[#allocation9] sm:$0x1] }
  0x79   : > { %v217_v11 = vsel %vm216_vm1, %v209_v9, 0.0  ;;  %v218_v12 = vsel %vm216_vm1, %v213_v10, 0.0 }
  0x7a   : > { %v219_v13 = vadd.f32 %v218_v12, %v217_v11 }
  0x7c   : > { %220 = vadd.xlane.f32.xlu0 %v219_v13 }
 0x105   : > { %v221_v14 = vpop.xlane.xlu0 %220 }
 0x106   : > { %v223_v15 = vmax.f32 %v221_v14, 1e-12 }
 0x108   : > { %v224_v17 = vmin.f32 %v223_v15, 1e+12  ;;  %231 = sbr.rel (%p329_p4) target bundleno = 281 (0x119), region = 44 }
 0x10a   : > { %v225_v18 = vadd.f32 %v224_v17, %v222_v16 }
 0x10c   : > { %227 = vst.msk [vmem:[#allocation9] sm:$0x1] %vm226_vm2, %v225_v18 }
 0x113   : > { %v232_v19 = vld [vmem:[#allocation9] sm:$0x1] }
 0x114   : > { %v233_v20 = vmul.f32 0.125, %v232_v19 }
 0x116   : > { %v234_v21 = vadd.f32 7e-12, %v233_v20 }
 0x118   : > { %235 = vst.msk [vmem:[#allocation9] sm:$0x1] %vm226_vm2, %v234_v21 }
 0x119 PF: > { %p356_p10 = scmp.eq.s32.totalorder %s637_s21, 7  ;;  %s579_s27 = smov [#allocation9]  }
 0x11a   : > { %s243_s4 = sshll.u32 %s579_s27, 4  ;;  %s244_s4 = int_to_ptr.vmem [resolvable:$true] %s243_s4 }
 0x11b   : > { %s481_s9 = scalar_lea.vmem %s244_s4, 16  ;;  %s487_s29 = scalar_lea.vmem %s244_s4, 32 }
 0x11c   : > { %p482_p12 = scmp.ne.s32.totalorder %s244_s4, %s481_s9  ;;  %p488_p3 = scmp.lt.s32.totalorder %s244_s4, %s244_s4 }
 0x11d   : > { %p489_p11 = scmp.lt.s32.totalorder %s487_s29, %s481_s9 }
 0x11e   : > { %p483_p0 = pnand %p482_p12, %p356_p10 }
 0x11f   : > { %p490_p13 = por %p489_p11, %p488_p3 }
 0x120   : > { %p484_p8 = pneg %p483_p0 }
 0x122   : > { %p491_p2 = pnand %p490_p13, %p484_p8 }
 0x124   : > { %494 = shalt.err (!%p491_p2)
}
 0x125   : > { %343 = dma.vmem_to_hbm [thread:$0]  (%p356_p10), %s244_s4, 16, %s808_s3, [#allocation6]  }
 0x126   : > { %544 = dma.done.wait (%p356_p10), [#allocation6], 16  }
 0x127   : > { %546 = vsyncadd (%p356_p10), [#allocation6], 4294967280 }
 0x128 PF: > { %s829_s10 = smov %s731_s15  ;;  %p21_p7 = scmp.ge.s32.totalorder %s640_s22, 10  }
 0x129   : > { %s830_s15 = smov %s553_s16  ;;  %s831_s16 = smov %s557_s17 }
 0x12a   : > { %s832_s17 = smov %s829_s10  ;;  %s833_s18 = smov %s565_s19 }
 0x12b   : > { %s834_s19 = smov %s569_s20  ;;  %s835_s20 = smov %s650_s25 }
 0x12c   : > { %s836_s0 = smov %s640_s22  ;;  %23 = sbr.rel (!%p21_p7) target bundleno = 13 (0xd), region = 86 }
 0x131   :  { %256 = vsyncpa [#allocation5], 1 }
 0x132   :  { %258 = vsyncpa [#allocation5 + $0x1], 1 }
 0x133   :  { %259 = vsyncpa [#allocation8], 1 }
 0x134   :  { %261 = vsyncpa [#allocation8 + $0x1], 1 }
 0x135   :  { %262 = vsyncpa [#allocation6], 1 }
 0x136   :  { %264 = vsyncpa [#allocation6 + $0x1], 1 }

</bundles_post_ra>
